<compile_context>
chip_gen: v7x
topology: tpu7x:2x2x1
jax: 0.10.0
libtpu: 0.0.40
codegen_flags: <defaults>
</compile_context>

<pallas_src>
import functools

import jax
import jax.numpy as jnp
from jax.experimental import pallas as pl
from jax.experimental.pallas import tpu as pltpu

LANES = 128
TILE_ROWS_MAX = 4096       # (4096, 128) f32 block = 2 MiB per input buffer
MIN_TILE_ROWS = 16         # keeps blocks bf16 (16,128)-packing friendly
PAD_LOGIT = -80.0          # sigmoid(-80)~0, log(1+exp(-80))~0: padded elems ~0


def _bce_blur_kernel(pred_ref, true_ref, out_ref, *,
                     inv_s, n_rows, tile_rows, tiles_per_split, ragged):
    c = pl.program_id(0)   # core-split axis ("parallel")
    i = pl.program_id(1)   # tile axis within the split ("arbitrary")

    @pl.when(i == 0)
    def _():
        out_ref[...] = jnp.zeros_like(out_ref)

    x = pred_ref[...].astype(jnp.float32)
    y = true_ref[...].astype(jnp.float32)

    # Shared transcendental: e = exp(-|x|) feeds both the numerically stable
    # BCE-with-logits term and the sigmoid.
    #   loss       = max(x, 0) - x*y + log(1 + exp(-|x|))
    #   sigmoid(x) = where(x >= 0, 1, e) / (1 + e)
    e = jnp.exp(-jnp.abs(x))
    d = 1.0 + e
    loss = jnp.maximum(x, 0.0) - x * y + jnp.log(d)

    # 1/(1+e): EUP approx reciprocal + one Newton step on the VPU (~f32 exact).
    r = pl.reciprocal(d, approx=True)
    r = r * (2.0 - d * r)
    p = jnp.where(x >= 0.0, 1.0, e) * r

    dx = p - y
    loss = loss * (1.0 - jnp.exp((dx - 1.0) * inv_s))

    if ragged:
        # The last grid block over-runs the row extent of the array: zero the
        # garbage rows.  Use jnp.where (not multiply): garbage may be NaN/Inf.
        start_row = (c * tiles_per_split + i) * tile_rows
        row_idx = start_row + jax.lax.broadcasted_iota(jnp.int32, loss.shape, 0)
        loss = jnp.where(row_idx < n_rows, loss, 0.0)

    # Sublane-aligned partial reduction: (R,128) -> (R//8, 8, 128) -> (8,128)
    # with pure VPU adds; the single cross-lane reduce happens in the wrapper.
    out_ref[...] += loss.reshape(-1, 8, LANES).sum(axis=0)


def bce_blur_with_logits_loss(pred, true, alpha=0.05):
    """Scalar mean BCE-blur loss. pred/true: same shape, any float dtype."""
    assert pred.shape == true.shape
    n_valid = int(pred.size)
    assert 0 < n_valid < 2**31  # keep in-kernel int32 row index math safe

    rows_needed = -(-n_valid // LANES)

    if rows_needed >= MIN_TILE_ROWS:
        # No row padding: the (possibly) ragged last block is masked in-kernel.
        tile_rows = min((rows_needed // MIN_TILE_ROWS) * MIN_TILE_ROWS,
                        TILE_ROWS_MAX)
        padded_rows = rows_needed
    else:
        # Tiny input: pad rows up to one minimal block (cheap at this size).
        tile_rows = MIN_TILE_ROWS
        padded_rows = MIN_TILE_ROWS

    n_tiles = -(-padded_rows // tile_rows)
    ragged = (padded_rows % tile_rows) != 0

    # Split the tile loop across two TensorCores when it divides evenly;
    # harmless on single-TC chips (v5e/v6e).
    # TODO(synk): drive the split with pltpu.CORE_PARALLEL / core_map on v7x
    # once the core count can be queried portably; "parallel" is a safe default.
    nsplit = 2 if (n_tiles >= 2 and n_tiles % 2 == 0) else 1
    tiles_per_split = n_tiles // nsplit

    flat_p = jnp.ravel(pred)
    flat_t = jnp.ravel(true)
    pad = padded_rows * LANES - n_valid
    if pad:
        # Lane-remainder (and tiny-input) pad only: logits get a large negative
        # value and targets 0, so padded elements contribute ~exp(-80) ~ 0.
        # TODO(synk): fold the sub-lane remainder into the in-kernel mask to
        # drop this HBM copy for sizes that are not multiples of 128.
        flat_p = jnp.pad(flat_p, (0, pad), constant_values=PAD_LOGIT)
        flat_t = jnp.pad(flat_t, (0, pad), constant_values=0.0)
    p2 = flat_p.reshape(padded_rows, LANES)
    t2 = flat_t.reshape(padded_rows, LANES)

    kernel = functools.partial(
        _bce_blur_kernel,
        inv_s=1.0 / (float(alpha) + 1e-4),
        n_rows=padded_rows,
        tile_rows=tile_rows,
        tiles_per_split=tiles_per_split,
        ragged=ragged,
    )
    in_map = lambda c, i, tps=tiles_per_split: (c * tps + i, 0)

    partials = pl.pallas_call(
        kernel,
        out_shape=jax.ShapeDtypeStruct((nsplit, 8, LANES), jnp.float32),
        grid_spec=pltpu.PrefetchScalarGridSpec(
            num_scalar_prefetch=0,
            grid=(nsplit, tiles_per_split),
            in_specs=[
                pl.BlockSpec((tile_rows, LANES), in_map),
                pl.BlockSpec((tile_rows, LANES), in_map),
            ],
            out_specs=pl.BlockSpec((None, 8, LANES), lambda c, i: (c, 0, 0)),
        ),
        compiler_params=pltpu.CompilerParams(
            dimension_semantics=("parallel", "arbitrary"),
        ),
    )(p2, t2)

    # Single cross-lane reduction + mean divide (tiny, done in the wrapper).
    # TODO(synk): pairwise-combine partials if >1e8-element inputs ever make
    # sequential f32 accumulation drift matter.
    return jnp.sum(partials) / jnp.float32(n_valid)


def _reference(pred, true, alpha=0.05):
    x = pred.astype(jnp.float32)
    y = true.astype(jnp.float32)
    loss = jnp.maximum(x, 0.0) - x * y + jnp.log1p(jnp.exp(-jnp.abs(x)))
    p = jax.nn.sigmoid(x)
    dx = p - y
    af = 1.0 - jnp.exp((dx - 1.0) / (alpha + 1e-4))
    return jnp.mean(loss * af)


if __name__ == "__main__":
    key = jax.random.PRNGKey(0)
    k1, k2 = jax.random.split(key)
    # NCHW logits and binary-ish targets, small shapes.
    pred = jax.random.normal(k1, (2, 4, 16, 16), dtype=jnp.float32)
    true = (jax.random.uniform(k2, (2, 4, 16, 16)) > 0.5).astype(jnp.float32)

    out = bce_blur_with_logits_loss(pred, true, alpha=0.05)
    out = jax.block_until_ready(out)

    ref = _reference(pred, true, alpha=0.05)
    assert jnp.allclose(out, ref, rtol=1e-5, atol=1e-5), (out, ref)
    print("KERNEL_OK")
</pallas_src>

<mosaic_0001>
module attributes {stable_mosaic.version = 11 : i64} {
  func.func @_bce_blur_kernel(%arg0: i32, %arg1: i32, %arg2: memref<16x128xf32, #tpu.memory_space<vmem>>, %arg3: memref<16x128xf32, #tpu.memory_space<vmem>>, %arg4: memref<1x8x128xf32, #tpu.memory_space<vmem>>) attributes {dimension_semantics = [#tpu.dimension_semantics<parallel>, #tpu.dimension_semantics<arbitrary>], iteration_bounds = array<i64: 1, 1>, scalar_prefetch = 0 : i64, scratch_operands = 0 : i64, tpu.core_type = #tpu.core_type<tc>, window_params = [{transform_indices = @transform_0, window_bounds = array<i64: 16, 128>}, {transform_indices = @transform_1, window_bounds = array<i64: 16, 128>}, {transform_indices = @transform_2, window_bounds = array<i64: 1, 8, 128>}]} {
    %c0_i32 = arith.constant 0 : i32
    %0 = arith.cmpi eq, %arg1, %c0_i32 : i32
    %1 = arith.extui %0 : i1 to i32
    %c0_i32_0 = arith.constant 0 : i32
    %2 = arith.cmpi ne, %1, %c0_i32_0 : i32
    scf.if %2 {
      %cst_19 = arith.constant 0.000000e+00 : f32
      %44 = vector.broadcast %cst_19 : f32 to vector<8x128xf32>
      %c0_20 = arith.constant 0 : index
      %c0_21 = arith.constant 0 : index
      %c0_22 = arith.constant 0 : index
      %45 = vector.load %arg4[%c0_20, %c0_21, %c0_22] : memref<1x8x128xf32, #tpu.memory_space<vmem>>, vector<1x8x128xf32>
      %46 = vector.shape_cast %45 : vector<1x8x128xf32> to vector<8x128xf32>
      %47 = vector.shape_cast %44 : vector<8x128xf32> to vector<1x8x128xf32>
      tpu.vector_store %arg4[%c0_20, %c0_21, %c0_22], %47 {strides = array<i32>} : memref<1x8x128xf32, #tpu.memory_space<vmem>>, vector<1x8x128xf32>,
    } else {
    }
    %c0 = arith.constant 0 : index
    %c0_1 = arith.constant 0 : index
    %3 = vector.load %arg2[%c0, %c0_1] : memref<16x128xf32, #tpu.memory_space<vmem>>, vector<16x128xf32>
    %c0_2 = arith.constant 0 : index
    %c0_3 = arith.constant 0 : index
    %4 = vector.load %arg3[%c0_2, %c0_3] : memref<16x128xf32, #tpu.memory_space<vmem>>, vector<16x128xf32>
    %5 = math.absf %3 : vector<16x128xf32>
    %cst = arith.constant 0.000000e+00 : f32
    %6 = vector.broadcast %cst : f32 to vector<16x128xf32>
    %7 = arith.subf %6, %5 : vector<16x128xf32>
    %8 = math.exp %7 : vector<16x128xf32>
    %cst_4 = arith.constant 1.000000e+00 : f32
    %9 = vector.broadcast %cst_4 : f32 to vector<16x128xf32>
    %10 = arith.addf %9, %8 : vector<16x128xf32>
    %cst_5 = arith.constant 0.000000e+00 : f32
    %11 = vector.broadcast %cst_5 : f32 to vector<16x128xf32>
    %12 = arith.maximumf %3, %11 : vector<16x128xf32>
    %13 = arith.mulf %3, %4 : vector<16x128xf32>
    %14 = arith.subf %12, %13 : vector<16x128xf32>
    %15 = math.log %10 : vector<16x128xf32>
    %16 = arith.addf %14, %15 : vector<16x128xf32>
    %17 = tpu.reciprocal %10 {approx = true} : vector<16x128xf32> -> vector<16x128xf32>
    %18 = arith.mulf %10, %17 : vector<16x128xf32>
    %cst_6 = arith.constant 2.000000e+00 : f32
    %19 = vector.broadcast %cst_6 : f32 to vector<16x128xf32>
    %20 = arith.subf %19, %18 : vector<16x128xf32>
    %21 = arith.mulf %17, %20 : vector<16x128xf32>
    %cst_7 = arith.constant 0.000000e+00 : f32
    %22 = vector.broadcast %cst_7 : f32 to vector<16x128xf32>
    %23 = arith.cmpf oge, %3, %22 : vector<16x128xf32>
    %cst_8 = arith.constant 1.000000e+00 : f32
    %24 = vector.broadcast %cst_8 : f32 to vector<16x128xf32>
    %25 = arith.select %23, %24, %8 : vector<16x128xi1>, vector<16x128xf32>
    %26 = arith.mulf %25, %21 : vector<16x128xf32>
    %27 = arith.subf %26, %4 : vector<16x128xf32>
    %cst_9 = arith.constant 1.000000e+00 : f32
    %28 = vector.broadcast %cst_9 : f32 to vector<16x128xf32>
    %29 = arith.subf %27, %28 : vector<16x128xf32>
    %cst_10 = arith.constant 19.9600792 : f32
    %30 = vector.broadcast %cst_10 : f32 to vector<16x128xf32>
    %31 = arith.mulf %29, %30 : vector<16x128xf32>
    %32 = math.exp %31 : vector<16x128xf32>
    %cst_11 = arith.constant 1.000000e+00 : f32
    %33 = vector.broadcast %cst_11 : f32 to vector<16x128xf32>
    %34 = arith.subf %33, %32 : vector<16x128xf32>
    %35 = arith.mulf %16, %34 : vector<16x128xf32>
    %c0_12 = arith.constant 0 : index
    %c0_13 = arith.constant 0 : index
    %c0_14 = arith.constant 0 : index
    %36 = vector.load %arg4[%c0_12, %c0_13, %c0_14] : memref<1x8x128xf32, #tpu.memory_space<vmem>>, vector<1x8x128xf32>
    %37 = vector.shape_cast %36 : vector<1x8x128xf32> to vector<8x128xf32>
    %38 = vector.shape_cast %35 : vector<16x128xf32> to vector<2x8x128xf32>
    %cst_15 = arith.constant dense<0.000000e+00> : vector<8x128xf32>
    %39 = vector.multi_reduction <add>, %38, %cst_15 [0] : vector<2x8x128xf32> to vector<8x128xf32>
    %40 = arith.addf %37, %39 : vector<8x128xf32>
    %c0_16 = arith.constant 0 : index
    %c0_17 = arith.constant 0 : index
    %c0_18 = arith.constant 0 : index
    %41 = vector.load %arg4[%c0_16, %c0_17, %c0_18] : memref<1x8x128xf32, #tpu.memory_space<vmem>>, vector<1x8x128xf32>
    %42 = vector.shape_cast %41 : vector<1x8x128xf32> to vector<8x128xf32>
    %43 = vector.shape_cast %40 : vector<8x128xf32> to vector<1x8x128xf32>
    tpu.vector_store %arg4[%c0_16, %c0_17, %c0_18], %43 {strides = array<i32>} : memref<1x8x128xf32, #tpu.memory_space<vmem>>, vector<1x8x128xf32>,
    return
  }
  func.func @transform_0(%arg0: i32, %arg1: i32) -> (i32, i32) {
    %c1_i32 = arith.constant 1 : i32
    %0 = arith.muli %arg0, %c1_i32 : i32
    %1 = arith.addi %0, %arg1 : i32
    %c0_i32 = arith.constant 0 : i32
    %c0_i32_0 = arith.constant 0 : i32
    return %1, %c0_i32 : i32, i32
  }
  func.func @transform_1(%arg0: i32, %arg1: i32) -> (i32, i32) {
    %c1_i32 = arith.constant 1 : i32
    %0 = arith.muli %arg0, %c1_i32 : i32
    %1 = arith.addi %0, %arg1 : i32
    %c0_i32 = arith.constant 0 : i32
    %c0_i32_0 = arith.constant 0 : i32
    return %1, %c0_i32 : i32, i32
  }
  func.func @transform_2(%arg0: i32, %arg1: i32) -> (i32, i32, i32) {
    %c0_i32 = arith.constant 0 : i32
    %c0_i32_0 = arith.constant 0 : i32
    %c0_i32_1 = arith.constant 0 : i32
    return %arg0, %c0_i32, %c0_i32_0 : i32, i32, i32
  }
}

</mosaic_0001>

<bundles_post_ra>
// kernel: tpu_custom_call.1
= control target key start
LH: loop header
LB: loop body
LE: loop exit
PB: predicated region body
PF: predicated region fallthrough
CT: control target
= control target key end

     0   :  { %7 = vsyncpa [#allocation3], 0  ;;  %s283_s0 = inlined_call_operand.hbm [shape: f32[16,128], index: 0, kind: input, shape index: {}]   ;;  %s284_s1 = inlined_call_operand.hbm [shape: f32[16,128], index: 1, kind: input, shape index: {}]   ;;  %s285_s2 = inlined_call_operand.hbm [shape: f32[1,8,128], index: 2, kind: output, shape index: {}]  }
   0x1   :  { %8 = vsyncpa [#allocation6], 0 }
   0x2   :  { %9 = vsyncpa [#allocation4], 0  ;;  %s227_s9 = smov [#allocation2]   ;;  %s155_s13 = scalar_lea.hbm %s283_s0, 256 }
   0x3   :  { %s19_s10 = sshll.u32 %s227_s9, 4  ;;  %p156_p0 = scmp.ne.s32.totalorder %s283_s0, %s155_s13  ;;  %s20_s10 = int_to_ptr.vmem [resolvable:$true] %s19_s10 }
   0x4   :  { %p159_p1 = scmp.lt.u32.totalorder %s155_s13, %s283_s0 }
   0x6   :  { %p161_p2 = pnand %p159_p1, %p156_p0 }
   0x8   :  { %164 = shalt.err (!%p161_p2)
}
   0x9   :  { %s165_s18 = scalar_lea.vmem %s20_s10, 256  ;;  %p170_p4 = scmp.lt.s32.totalorder %s20_s10, %s20_s10 }
   0xa   :  { %p166_p3 = scmp.ne.s32.totalorder %s20_s10, %s165_s18  ;;  %p171_p5 = scmp.lt.s32.totalorder %s165_s18, %s165_s18 }
   0xc   :  { %p172_p6 = por %p171_p5, %p170_p4 }
   0xe   :  { %p173_p7 = pnand %p172_p6, %p166_p3 }
  0x10   :  { %176 = shalt.err (!%p173_p7)
}
  0x11   :  { %s228_s19 = smov 128   ;;  %s229_s20 = smov 8  }
  0x12   :  { %25 = dma.hbm_to_vmem [thread:$0]  %s283_s0, 256, %s20_s10, [#allocation3], %s228_s19, %s228_s19, %s229_s20  }
  0x13   :  { %s230_s23 = smov [#allocation5]   ;;  %s177_s27 = scalar_lea.hbm %s284_s1, 256 }
  0x14   :  { %s35_s24 = sshll.u32 %s230_s23, 4  ;;  %p178_p8 = scmp.ne.s32.totalorder %s284_s1, %s177_s27  ;;  %s36_s24 = int_to_ptr.vmem [resolvable:$true] %s35_s24 }
  0x15   :  { %p181_p9 = scmp.lt.u32.totalorder %s177_s27, %s284_s1 }
  0x17   :  { %p183_p10 = pnand %p181_p9, %p178_p8 }
  0x19   :  { %186 = shalt.err (!%p183_p10)
}
  0x1a   :  { %s187_s4 = scalar_lea.vmem %s36_s24, 256  ;;  %p192_p12 = scmp.lt.s32.totalorder %s36_s24, %s36_s24 }
  0x1b   :  { %p188_p11 = scmp.ne.s32.totalorder %s36_s24, %s187_s4  ;;  %p193_p13 = scmp.lt.s32.totalorder %s187_s4, %s187_s4 }
  0x1d   :  { %p194_p0 = por %p193_p13, %p192_p12 }
  0x1f   :  { %p195_p1 = pnand %p194_p0, %p188_p11 }
  0x21   :  { %198 = shalt.err (!%p195_p1)
}
  0x22   :  { %41 = dma.hbm_to_vmem [thread:$0]  %s284_s1, 256, %s36_s24, [#allocation6], %s228_s19, %s228_s19, %s229_s20  }
  0x23   :  { %221 = dma.done.wait [#allocation3], 256  }
  0x24   :  { %222 = vsyncadd [#allocation3], 4294967040 }
  0x25   :  { %223 = dma.done.wait [#allocation6], 256  }
  0x26   :  { %224 = vsyncadd [#allocation6], 4294967040  ;;  %v57_v0 = vld [vmem:[#allocation2] sm:$0xff]  ;;  %v58_v1 = vld [vmem:[#allocation2 + $0x8] sm:$0xff]  ;;  %s231_s1 = smov [#allocation7]  }
  0x27   :  { %v61_v2 = vand.u32 2147483647, %v57_v0  ;;  %v62_v3 = vand.u32 2147483647, %v58_v1  ;;  %vm91_vm0 = vcmp.ge.f32.partialorder %v57_v0, 0.0  ;;  %vm92_vm1 = vcmp.ge.f32.partialorder %v58_v1, 0.0 }
  0x28   :  { %v59_v21 = vld [vmem:[#allocation5] sm:$0xff]  ;;  %v60_v23 = vld [vmem:[#allocation5 + $0x8] sm:$0xff]  ;;  %v71_v34 = vmax.f32 %v57_v0, 0.0  ;;  %v72_v37 = vmax.f32 %v58_v1, 0.0  ;;  %s121_s6 = sshll.u32 %s231_s1, 4  ;;  %s122_s6 = int_to_ptr.vmem [resolvable:$true] %s121_s6 }
  0x29   :  { %v63_v4 = vsub.f32 0.0, %v61_v2  ;;  %v64_v5 = vsub.f32 0.0, %v62_v3  ;;  %v73_v35 = vmul.f32 %v59_v21, %v57_v0  ;;  %v74_v38 = vmul.f32 %v60_v23, %v58_v1  ;;  %s199_s7 = scalar_lea.vmem %s122_s6, 128  ;;  %p204_p3 = scmp.lt.s32.totalorder %s122_s6, %s122_s6 }
  0x2a   :  { %p200_p2 = scmp.ne.s32.totalorder %s122_s6, %s199_s7  ;;  %p205_p4 = scmp.lt.s32.totalorder %s199_s7, %s199_s7 }
  0x2b   :  { %v65_v6 = vmul.f32 1.442695, %v63_v4  ;;  %v67_v7 = vmul.f32 1.442695, %v64_v5  ;;  %v75_v40 = vsub.f32 %v71_v34, %v73_v35  ;;  %v76_v42 = vsub.f32 %v72_v37, %v74_v38 }
  0x2c   :  { %p206_p5 = por %p205_p4, %p204_p3 }
  0x2d   :  { %139 = vpow2.f32 %v65_v6 }
  0x2e   :  { %141 = vpow2.f32 %v67_v7  ;;  %p207_p6 = pnand %p206_p5, %p200_p2 }
  0x37   :  { %v140_v8 = vpop.eup %139 }
  0x38   :  { %v142_v9 = vpop.eup %141  ;;  %v69_v10 = vadd.f32 1.0, %v140_v8  ;;  %v93_v18 = vsel %vm91_vm0, 1.0, %v140_v8 }
  0x39   :  { %v70_v11 = vadd.f32 1.0, %v142_v9  ;;  %v94_v20 = vsel %vm92_vm1, 1.0, %v142_v9 }
  0x3a   :  { %143 = vrcp.f32 %v69_v10 }
  0x3b   :  { %145 = vrcp.f32 %v70_v11 }
  0x3c   :  { %147 = vlog2.f32 %v69_v10 }
  0x3d   :  { %149 = vlog2.f32 %v70_v11 }
  0x44   :  { %v144_v12 = vpop.eup %143 }
  0x45   :  { %v146_v13 = vpop.eup %145  ;;  %v85_v14 = vmul.f32 %v144_v12, %v69_v10 }
  0x46   :  { %v86_v15 = vmul.f32 %v146_v13, %v70_v11  ;;  %v148_v36 = vpop.eup %147 }
  0x47   :  { %v87_v16 = vsub.f32 2.0, %v85_v14  ;;  %v150_v39 = vpop.eup %149  ;;  %v78_v41 = vmul.f32 0.6931472, %v148_v36 }
  0x48   :  { %v88_v17 = vsub.f32 2.0, %v86_v15  ;;  %v80_v43 = vmul.f32 0.6931472, %v150_v39 }
  0x49   :  { %v89_v19 = vmul.f32 %v144_v12, %v87_v16  ;;  %v81_v44 = vadd.f32 %v78_v41, %v75_v40 }
  0x4a   :  { %v90_v22 = vmul.f32 %v146_v13, %v88_v17  ;;  %v82_v46 = vadd.f32 %v80_v43, %v76_v42 }
  0x4b   :  { %v95_v24 = vmul.f32 %v93_v18, %v89_v19 }
  0x4c   :  { %v96_v25 = vmul.f32 %v94_v20, %v90_v22 }
  0x4d   :  { %v97_v26 = vsub.f32 %v95_v24, %v59_v21 }
  0x4e   :  { %v98_v27 = vsub.f32 %v96_v25, %v60_v23 }
  0x4f   :  { %v131_v28 = vadd.f32 -1.0, %v97_v26 }
  0x50   :  { %v132_v29 = vadd.f32 -1.0, %v98_v27 }
  0x51   :  { %v101_v30 = vmul.f32 19.96008, %v131_v28 }
  0x52   :  { %v102_v31 = vmul.f32 19.96008, %v132_v29 }
  0x53   :  { %v103_v32 = vmul.f32 1.442695, %v101_v30 }
  0x54   :  { %v105_v33 = vmul.f32 1.442695, %v102_v31 }
  0x55   :  { %151 = vpow2.f32 %v103_v32 }
  0x56   :  { %153 = vpow2.f32 %v105_v33 }
  0x5f   :  { %v152_v45 = vpop.eup %151 }
  0x60   :  { %v154_v47 = vpop.eup %153  ;;  %v107_v48 = vsub.f32 1.0, %v152_v45 }
  0x61   :  { %v108_v49 = vsub.f32 1.0, %v154_v47 }
  0x62   :  { %v109_v50 = vmul.f32 %v107_v48, %v81_v44 }
  0x63   :  { %v110_v51 = vmul.f32 %v108_v49, %v82_v46 }
  0x65   :  { %v112_v52 = vadd.f32 %v110_v51, %v109_v50 }
  0x67   :  { %114 = vst [vmem:[#allocation7] sm:$0xff] %v112_v52 }
  0x68   :  { %210 = shalt.err (!%p207_p6)
}
  0x69   :  { %s211_s10 = scalar_lea.hbm %s285_s2, 128 }
  0x6a   :  { %p212_p7 = scmp.ne.s32.totalorder %s285_s2, %s211_s10  ;;  %p215_p8 = scmp.lt.u32.totalorder %s211_s10, %s285_s2 }
  0x6c   :  { %p217_p9 = pnand %p215_p8, %p212_p7 }
  0x6e   :  { %220 = shalt.err (!%p217_p9)
}
  0x6f   :  { %124 = dma.vmem_to_hbm [thread:$0]  %s122_s6, 128, %s285_s2, [#allocation4]  }
  0x70   :  { %225 = dma.done.wait [#allocation4], 128  }
  0x71   :  { %226 = vsyncadd [#allocation4], 4294967168 }
  0x72   :  { %128 = vsyncpa [#allocation3], 1 }
  0x73   :  { %129 = vsyncpa [#allocation6], 1 }
  0x74   :  { %130 = vsyncpa [#allocation4], 1 }

</bundles_post_ra>
